<compile_context>
chip_gen: v5e
topology: v5e:2x2
jax: 0.10.0
libtpu: 0.0.40
codegen_flags: <defaults>
</compile_context>

<pallas_src>
import functools

import jax
import jax.numpy as jnp
from jax.experimental import pallas as pl
from jax.experimental.pallas import tpu as pltpu

LANE = 128
SUBLANE = 8


def _round_up(v, m):
    return (v + m - 1) // m * m


def _ffn_kernel(x_ref, wt_ref, bias_ref, a2_ref, b2_ref, mask_ref, o_ref, *,
                eps, d_valid, d_pad, tn, approx_recip):
    """One (TM, D_pad) row-block of x against one (D_pad, TN) column-block of W^T."""
    x = x_ref[...].astype(jnp.float32)                        # [TM, D_pad]

    # ---- LayerNorm (torch-style: unbiased std, eps added to the std) ----
    mean = jnp.sum(x, axis=-1, keepdims=True) * (1.0 / d_valid)
    diff = x - mean
    if d_pad != d_valid:
        # Padded lanes hold (0 - mean); a resident 0/1 mask removes them from the
        # variance (cheaper than regenerating broadcasted_iota + where per step).
        diff = diff * mask_ref[...]
    var_unbiased = jnp.sum(diff * diff, axis=-1, keepdims=True) * (1.0 / (d_valid - 1))
    # EUP reciprocal instead of a VPU divide (EUP slot is otherwise idle here).
    inv_std = pl.reciprocal(jnp.sqrt(var_unbiased) + eps, approx=approx_recip)
    # a2/b2 are zero in the padded lanes, so xn is zero there as well.
    xn = (a2_ref[...] * inv_std) * diff + b2_ref[...]

    # ---- Linear (MXU, bf16 operands / f32 accumulation) + bias + ReLU ----
    y = jnp.dot(xn.astype(jnp.bfloat16), wt_ref[...],
                preferred_element_type=jnp.float32)           # [TM, TN]
    y = jnp.maximum(y + bias_ref[...], 0.0)

    # ---- Residual add on the matching columns of x (dropout == identity) ----
    if tn == d_pad:
        x_res = x
    else:
        col0 = pl.multiple_of(pl.program_id(1) * tn, LANE)
        x_res = x_ref[:, pl.ds(col0, tn)].astype(jnp.float32)
    # NOTE: rows past m in the last (ragged) M tile are uninitialized; all math
    # here is row-independent and Pallas discards those output rows, so this is
    # benign. Revisit if cross-row state (e.g. shared-RNG dropout) is ever added.
    o_ref[...] = (y + x_res).astype(o_ref.dtype)


def prepare_params(w, b, a2, b2):
    """One-time parameter prep (do at model-load time, not per forward call):
    transpose W to [D_in, D_out], zero-pad feature dims to a multiple of 128,
    pre-cast the matmul weight to bf16, and build the valid-lane mask."""
    d = w.shape[1]
    assert w.shape[0] == w.shape[1], "FeedForward.w_1 is a square Linear(size, size)"
    assert d >= 2, "unbiased std (divide by D-1) needs at least 2 features"
    d_pad = _round_up(d, LANE)
    pad = d_pad - d
    w_t = jnp.pad(jnp.transpose(w).astype(jnp.float32), ((0, pad), (0, pad)))
    mask = jnp.pad(jnp.ones((d,), jnp.float32), (0, pad))
    return {
        "w_t": w_t.astype(jnp.bfloat16),                                   # [D_pad, D_pad]
        "b": jnp.pad(b.astype(jnp.float32), (0, pad)).reshape(1, d_pad),
        "a2": jnp.pad(a2.astype(jnp.float32), (0, pad)).reshape(1, d_pad),
        "b2": jnp.pad(b2.astype(jnp.float32), (0, pad)).reshape(1, d_pad),
        "mask": mask.reshape(1, d_pad),
        "d": d,
        "d_pad": d_pad,
    }


def _vmem_phys_bytes():
    try:
        return int(pltpu.get_tpu_info().vmem_capacity_bytes)
    except Exception:
        return 64 * 1024 * 1024   # conservative (v7x-sized) fallback


def _plan_tiles(m, d_pad, x_itemsize, budget):
    """Pick (tm, tn, nj): M tile rows, N (output-feature) tile width, # N blocks."""
    vec_bytes = 4 * d_pad * 4     # bias / a2 / b2 / mask, f32, single-buffered

    def usage(tm, tn, nj):
        w_bufs = 1 if nj == 1 else 2                         # resident vs streamed weight
        resident = w_bufs * d_pad * tn * 2 + vec_bytes       # bf16 weight block(s)
        io = 2 * tm * d_pad * x_itemsize + 2 * tm * tn * x_itemsize  # x/out, 2 buffers
        inter = tm * (8 * d_pad + 4 * tn)                    # f32 x+diff, bf16 xn, f32 y
        return resident + io + inter

    # Number of N blocks: smallest nj whose weight slab + a modest M tile fits.
    nj = 1
    min_tm = min(256, _round_up(max(m, SUBLANE), SUBLANE))
    while (usage(min_tm, d_pad // nj, nj) > budget
           and d_pad % (nj * 2) == 0
           and (d_pad // (nj * 2)) % LANE == 0):
        nj *= 2
    tn = d_pad // nj

    # Largest M tile that fits; capped at 1024 rows and so that there are >=2
    # grid steps along M (keeps both v7x TensorCores busy; no-op on v5e/v6e).
    tm = min(1024, max(SUBLANE, _round_up(pl.cdiv(m, 2), SUBLANE)))
    while tm > SUBLANE and usage(tm, tn, nj) > budget:
        tm -= SUBLANE
    if tm >= 512:
        tm = (tm // 256) * 256    # 256-align large tiles for the 256x256 MXU
    return tm, tn, nj


def feed_forward(x, params, *, eps=1e-6, approx_recip=True):
    """x: [..., D] float (kept in its native dtype). params: prepare_params() output."""
    d, d_pad = params["d"], params["d_pad"]
    orig_shape = x.shape
    assert orig_shape[-1] == d
    x2d = x.reshape(-1, d)                 # native dtype: no extra HBM cast passes
    m = x2d.shape[0]
    if d_pad != d:
        x2d = jnp.pad(x2d, ((0, 0), (0, d_pad - d)))

    phys = _vmem_phys_bytes()
    budget = (phys * 3) // 4               # ~96 MiB on v5e/v6e, ~48 MiB on v7x
    vmem_limit = min(phys - 2 * 1024 * 1024, budget + 16 * 1024 * 1024)

    tm, tn, nj = _plan_tiles(m, d_pad, x2d.dtype.itemsize, budget)
    grid = (pl.cdiv(m, tm), nj)

    resident = pl.Buffered(1)              # single-buffer grid-invariant operands
    wt_mode = resident if nj == 1 else None
    bias_mode = resident if nj == 1 else None

    def bs(shape, index_map, mode=None):
        if mode is None:
            return pl.BlockSpec(shape, index_map)
        return pl.BlockSpec(shape, index_map, pipeline_mode=mode)

    kernel = functools.partial(_ffn_kernel, eps=eps, d_valid=d, d_pad=d_pad,
                               tn=tn, approx_recip=approx_recip)
    out = pl.pallas_call(
        kernel,
        out_shape=jax.ShapeDtypeStruct((m, d_pad), x.dtype),
        grid=grid,
        in_specs=[
            bs((tm, d_pad), lambda i, j: (i, 0)),              # x: streamed over M
            bs((d_pad, tn), lambda i, j: (0, j), wt_mode),     # W^T: resident / N-streamed
            bs((1, tn), lambda i, j: (0, j), bias_mode),       # bias
            bs((1, d_pad), lambda i, j: (0, 0), resident),     # LN a2
            bs((1, d_pad), lambda i, j: (0, 0), resident),     # LN b2
            bs((1, d_pad), lambda i, j: (0, 0), resident),     # valid-lane mask
        ],
        out_specs=pl.BlockSpec((tm, tn), lambda i, j: (i, j)),
        compiler_params=pltpu.CompilerParams(
            dimension_semantics=("parallel", "parallel"),
            vmem_limit_bytes=int(vmem_limit),
        ),
    )(x2d, params["w_t"], params["b"], params["a2"], params["b2"], params["mask"])

    if d_pad != d:
        out = out[:, :d]
    return out.reshape(orig_shape)


if __name__ == "__main__":
    # Small shapes consistent with the module: (batch, seq, size)
    batch, seq, size = 2, 8, 32

    key = jax.random.PRNGKey(0)
    kx, kw, kb = jax.random.split(key, 3)

    x = jax.random.normal(kx, (batch, seq, size), dtype=jnp.float32)

    # Deterministic synthetic parameters (torch Linear layout: [out, in]).
    w1_weight = jax.random.normal(kw, (size, size), dtype=jnp.float32) * 0.05
    w1_bias = jax.random.normal(kb, (size,), dtype=jnp.float32) * 0.01
    ln_a2 = jnp.ones((size,), dtype=jnp.float32)
    ln_b2 = jnp.zeros((size,), dtype=jnp.float32)

    params = prepare_params(w1_weight, w1_bias, ln_a2, ln_b2)
    out = feed_forward(x, params)
    jax.block_until_ready(out)

    # Pure-f32 JAX reference of the same math. The kernel uses bf16 MXU operands
    # and an approximate EUP reciprocal, so use a correspondingly relaxed tolerance.
    mean = jnp.mean(x, axis=-1, keepdims=True)
    diff = x - mean
    std = jnp.sqrt(jnp.sum(diff * diff, axis=-1, keepdims=True) / (size - 1))
    xn = ln_a2 * diff / (std + 1e-6) + ln_b2
    ref = jnp.maximum(xn @ w1_weight.T + w1_bias, 0.0) + x
    max_err = float(jnp.max(jnp.abs(out - ref)))
    assert jnp.allclose(out, ref, atol=2e-2, rtol=2e-2), f"max abs err = {max_err}"
    print("KERNEL_OK")
</pallas_src>

<mosaic_0001>
module attributes {stable_mosaic.version = 11 : i64} {
  func.func @_ffn_kernel(%arg0: i32, %arg1: i32, %arg2: memref<8x128xf32, #tpu.memory_space<vmem>>, %arg3: memref<128x128xbf16, #tpu.memory_space<vmem>>, %arg4: memref<1x128xf32, #tpu.memory_space<vmem>>, %arg5: memref<1x128xf32, #tpu.memory_space<vmem>>, %arg6: memref<1x128xf32, #tpu.memory_space<vmem>>, %arg7: memref<1x128xf32, #tpu.memory_space<vmem>>, %arg8: memref<8x128xf32, #tpu.memory_space<vmem>>) attributes {dimension_semantics = [#tpu.dimension_semantics<parallel>, #tpu.dimension_semantics<parallel>], iteration_bounds = array<i64: 2, 1>, scalar_prefetch = 0 : i64, scratch_operands = 0 : i64, tpu.core_type = #tpu.core_type<tc>, window_params = [{transform_indices = @transform_0, window_bounds = array<i64: 8, 128>}, {pipeline_mode = #tpu.pipeline_mode<synchronous>, transform_indices = @transform_1, window_bounds = array<i64: 128, 128>}, {pipeline_mode = #tpu.pipeline_mode<synchronous>, transform_indices = @transform_2, window_bounds = array<i64: 1, 128>}, {pipeline_mode = #tpu.pipeline_mode<synchronous>, transform_indices = @transform_3, window_bounds = array<i64: 1, 128>}, {pipeline_mode = #tpu.pipeline_mode<synchronous>, transform_indices = @transform_4, window_bounds = array<i64: 1, 128>}, {pipeline_mode = #tpu.pipeline_mode<synchronous>, transform_indices = @transform_5, window_bounds = array<i64: 1, 128>}, {transform_indices = @transform_6, window_bounds = array<i64: 8, 128>}]} {
    %c0 = arith.constant 0 : index
    %c0_0 = arith.constant 0 : index
    %0 = vector.load %arg2[%c0, %c0_0] : memref<8x128xf32, #tpu.memory_space<vmem>>, vector<8x128xf32>
    %cst = arith.constant dense<0.000000e+00> : vector<8xf32>
    %1 = vector.multi_reduction <add>, %0, %cst [1] : vector<8x128xf32> to vector<8xf32>
    %2 = vector.shape_cast %1 : vector<8xf32> to vector<8x1xf32>
    %cst_1 = arith.constant 3.125000e-02 : f32
    %3 = vector.broadcast %cst_1 : f32 to vector<8x1xf32>
    %4 = arith.mulf %2, %3 : vector<8x1xf32>
    %5 = vector.broadcast %4 : vector<8x1xf32> to vector<8x128xf32>
    %6 = arith.subf %0, %5 : vector<8x128xf32>
    %c0_2 = arith.constant 0 : index
    %c0_3 = arith.constant 0 : index
    %7 = vector.load %arg7[%c0_2, %c0_3] : memref<1x128xf32, #tpu.memory_space<vmem>>, vector<1x128xf32>
    %8 = vector.broadcast %7 : vector<1x128xf32> to vector<8x128xf32>
    %9 = arith.mulf %6, %8 : vector<8x128xf32>
    %10 = arith.mulf %9, %9 : vector<8x128xf32>
    %cst_4 = arith.constant dense<0.000000e+00> : vector<8xf32>
    %11 = vector.multi_reduction <add>, %10, %cst_4 [1] : vector<8x128xf32> to vector<8xf32>
    %12 = vector.shape_cast %11 : vector<8xf32> to vector<8x1xf32>
    %cst_5 = arith.constant 0.0322580636 : f32
    %13 = vector.broadcast %cst_5 : f32 to vector<8x1xf32>
    %14 = arith.mulf %12, %13 : vector<8x1xf32>
    %15 = math.sqrt %14 : vector<8x1xf32>
    %cst_6 = arith.constant 9.99999997E-7 : f32
    %16 = vector.broadcast %cst_6 : f32 to vector<8x1xf32>
    %17 = arith.addf %15, %16 : vector<8x1xf32>
    %18 = tpu.reciprocal %17 {approx = true} : vector<8x1xf32> -> vector<8x1xf32>
    %c0_7 = arith.constant 0 : index
    %c0_8 = arith.constant 0 : index
    %19 = vector.load %arg5[%c0_7, %c0_8] : memref<1x128xf32, #tpu.memory_space<vmem>>, vector<1x128xf32>
    %20 = vector.broadcast %19 : vector<1x128xf32> to vector<8x128xf32>
    %21 = vector.broadcast %18 : vector<8x1xf32> to vector<8x128xf32>
    %22 = arith.mulf %20, %21 : vector<8x128xf32>
    %23 = arith.mulf %22, %9 : vector<8x128xf32>
    %c0_9 = arith.constant 0 : index
    %c0_10 = arith.constant 0 : index
    %24 = vector.load %arg6[%c0_9, %c0_10] : memref<1x128xf32, #tpu.memory_space<vmem>>, vector<1x128xf32>
    %25 = vector.broadcast %24 : vector<1x128xf32> to vector<8x128xf32>
    %26 = arith.addf %23, %25 : vector<8x128xf32>
    %27 = arith.truncf %26 : vector<8x128xf32> to vector<8x128xbf16>
    %c0_11 = arith.constant 0 : index
    %c0_12 = arith.constant 0 : index
    %28 = vector.load %arg3[%c0_11, %c0_12] : memref<128x128xbf16, #tpu.memory_space<vmem>>, vector<128x128xbf16>
    %cst_13 = arith.constant dense<0.000000e+00> : vector<8x128xf32>
    %29 = tpu.matmul %27, %28, %cst_13 {dimension_numbers = #tpu.dot_dimension_numbers<[1], [0], [0], [1], [0, 0, 1, 1], [], []>} : vector<8x128xbf16>, vector<128x128xbf16>, vector<8x128xf32> -> vector<8x128xf32>
    %c0_14 = arith.constant 0 : index
    %c0_15 = arith.constant 0 : index
    %30 = vector.load %arg4[%c0_14, %c0_15] : memref<1x128xf32, #tpu.memory_space<vmem>>, vector<1x128xf32>
    %31 = vector.broadcast %30 : vector<1x128xf32> to vector<8x128xf32>
    %32 = arith.addf %29, %31 : vector<8x128xf32>
    %cst_16 = arith.constant 0.000000e+00 : f32
    %33 = vector.broadcast %cst_16 : f32 to vector<8x128xf32>
    %34 = arith.maximumf %32, %33 : vector<8x128xf32>
    %35 = arith.addf %34, %0 : vector<8x128xf32>
    %c0_17 = arith.constant 0 : index
    %c0_18 = arith.constant 0 : index
    %36 = vector.load %arg8[%c0_17, %c0_18] : memref<8x128xf32, #tpu.memory_space<vmem>>, vector<8x128xf32>
    tpu.vector_store %arg8[%c0_17, %c0_18], %35 {strides = array<i32>} : memref<8x128xf32, #tpu.memory_space<vmem>>, vector<8x128xf32>,
    return
  }
  func.func @transform_0(%arg0: i32, %arg1: i32) -> (i32, i32) {
    %c0_i32 = arith.constant 0 : i32
    %c0_i32_0 = arith.constant 0 : i32
    return %arg0, %c0_i32 : i32, i32
  }
  func.func @transform_1(%arg0: i32, %arg1: i32) -> (i32, i32) {
    %c0_i32 = arith.constant 0 : i32
    %c0_i32_0 = arith.constant 0 : i32
    return %c0_i32, %arg1 : i32, i32
  }
  func.func @transform_2(%arg0: i32, %arg1: i32) -> (i32, i32) {
    %c0_i32 = arith.constant 0 : i32
    %c0_i32_0 = arith.constant 0 : i32
    return %c0_i32, %arg1 : i32, i32
  }
  func.func @transform_3(%arg0: i32, %arg1: i32) -> (i32, i32) {
    %c0_i32 = arith.constant 0 : i32
    %c0_i32_0 = arith.constant 0 : i32
    %c0_i32_1 = arith.constant 0 : i32
    return %c0_i32, %c0_i32_0 : i32, i32
  }
  func.func @transform_4(%arg0: i32, %arg1: i32) -> (i32, i32) {
    %c0_i32 = arith.constant 0 : i32
    %c0_i32_0 = arith.constant 0 : i32
    %c0_i32_1 = arith.constant 0 : i32
    return %c0_i32, %c0_i32_0 : i32, i32
  }
  func.func @transform_5(%arg0: i32, %arg1: i32) -> (i32, i32) {
    %c0_i32 = arith.constant 0 : i32
    %c0_i32_0 = arith.constant 0 : i32
    %c0_i32_1 = arith.constant 0 : i32
    return %c0_i32, %c0_i32_0 : i32, i32
  }
  func.func @transform_6(%arg0: i32, %arg1: i32) -> (i32, i32) {
    %c0_i32 = arith.constant 0 : i32
    return %arg0, %arg1 : i32, i32
  }
}

</mosaic_0001>

<bundles_post_ra>
// kernel: tpu_custom_call.1
= control target key start
LH: loop header
LB: loop body
LE: loop exit
PB: predicated region body
PF: predicated region fallthrough
CT: control target
= control target key end

     0   :  { %s1049_s0 = inlined_call_operand.hbm [shape: f32[16,128], index: 0, kind: input, shape index: {}]   ;;  %s1050_s1 = inlined_call_operand.hbm [shape: bf16[128,128], index: 1, kind: input, shape index: {}]   ;;  %s1051_s2 = inlined_call_operand.vmem [shape: f32[1,128], index: 2, kind: input, shape index: {}]   ;;  %s1052_s3 = inlined_call_operand.vmem [shape: f32[1,128], index: 3, kind: input, shape index: {}]   ;;  %s1053_s4 = inlined_call_operand.vmem [shape: f32[1,128], index: 4, kind: input, shape index: {}]   ;;  %s1054_s5 = inlined_call_operand.vmem [shape: f32[1,128], index: 5, kind: input, shape index: {}]   ;;  %s1055_s6 = inlined_call_operand.hbm [shape: f32[16,128], index: 6, kind: output, shape index: {}]  }
   0x1   :  { %1056 = sst [smem:[#allocation11_spill]] %s1050_s1 }
   0x2   :  { %11 = vsyncpa [#allocation3], 0 }
   0x3   :  { %13 = vsyncpa [#allocation3 + $0x1], 0 }
   0x4   :  { %14 = vsyncpa [#allocation6], 0 }
   0x5   :  { %15 = vsyncpa [#allocation4], 0 }
   0x6   :  { %17 = vsyncpa [#allocation4 + $0x1], 0  ;;  %s890_s21 = smov 0   ;;  %s892_s22 = smov 0  }
   0x7   :  { %s894_s23 = smov 0   ;;  %s896_s24 = smov 0  }
   0x8   :  { %s898_s25 = smov 0   ;;  %s900_s26 = smov 0  }
   0x9 LB: > { %s565_s27 = sadd.s32 4294967295, %s850_s26   ;;  %p567_p0 = scmp.ge.s32.totalorder %s850_s26, 1  ;;  %s850_s26 = sphi %s900_s26, %s23_s26   ;;  %s846_s25 = sphi %s898_s25, %s1068_s25   ;;  %s842_s24 = sphi %s896_s24, %s1067_s24   ;;  %s838_s23 = sphi %s894_s23, %s1066_s23   ;;  %s834_s22 = sphi %s892_s22, %s1065_s22   ;;  %s830_s21 = sphi %s890_s21, %s1064_s21  }
   0xa   : > { %p922_p1 = scmp.eq.s32.totalorder %s565_s27, 0  ;;  %p209_p2 = scmp.lt.s32.totalorder %s850_s26, 3 }
   0xb   : > { %s1058_s1 = sld [smem:[#allocation11_spill]]  ;;  %s852_s9 = smov [#allocation5]  }
   0xc   : > { %p930_p3 = pnand %p567_p0, %p209_p2  ;;  %s224_s10 = sshll.u32 %s852_s9, 4  ;;  %s225_s10 = int_to_ptr.vmem [resolvable:$true] %s224_s10 }
   0xd   : > { %p570_p6 = scmp.ge.s32.totalorder %s850_s26, 2  ;;  %s853_s11 = smov 64  }
   0xe   : > { %p629_p4 = pneg %p930_p3  ;;  %s854_s12 = smov 4  }
   0xf   : > { %s566_s13 = sadd.s32 4294967294, %s850_s26   ;;  %s35_s14 = sadd.s32 1, %s846_s25 }
  0x10   : > { %p630_p5 = pnand %p629_p4, %p922_p1  ;;  %s42_s15 = sadd.s32 1, %s838_s23 }
  0x11   : > { %s222_s7 = sshll.u32 %s1058_s1, 4  ;;  %p37_p7 = scmp.ge.s32.totalorder %s35_s14, 2  ;;  %s223_s7 = int_to_ptr.hbm [resolvable:$true] %s222_s7 }
  0x12   : > { %632 = dma.hbm_to_vmem [thread:$0]  (!%p630_p5), %s223_s7, 1024, %s225_s10, [#allocation6], %s853_s11, %s853_s11, %s854_s12  }
  0x13   : > { %p49_p8 = scmp.ne.s32.totalorder %s838_s23, %s834_s22  ;;  %p50_p9 = scmp.eq.s32.totalorder %s850_s26, 0 }
  0x14   : > { %p55_p10 = scmp.ne.s32.totalorder %s834_s22, %s830_s21  ;;  %s1070_s14 = smov (%p37_p7, %s35_s14), 0 }
  0x15   : > { %p949_p11 = por %p50_p9, %p49_p8  ;;  %s39_s18 = ssub.s32 %s846_s25, %s1070_s14 }
  0x16   : > { %p955_p12 = por %p922_p1, %p55_p10  ;;  %p196_p13 = scmp.eq.s32.totalorder %s565_s27, 1 }
  0x17   : > { %p40_p0 = scmp.eq.s32.totalorder %s39_s18, 0  ;;  %p202_p2 = scmp.eq.s32.totalorder %s566_s13, 1 }
  0x18   : > { %p961_p4 = por %p196_p13, %p49_p8  ;;  %p642_p5 = scmp.lt.s32.totalorder %s850_s26, 2 }
  0x19   : > { %s967_s20 = scalar_select %p40_p0, %s838_s23, %s42_s15  }
  0x1a   : > { %p969_p7 = por %p202_p2, %p55_p10  ;;  %s253_s30 = sand.u32 1, %s838_s23  }
  0x1b   : > { %s571_s7 = sshll.u32 %s253_s30, 3  ;;  %s572_s9 = sshll.u32 %s846_s25, 3 }
  0x1c   : > { %s261_s27 = scalar_lea.hbm %s1049_s0, %s572_s9  ;;  %s257_s12 = scalar_lea.vmem [#allocation2], %s571_s7 }
  0x1d   : > { %s265_s13 = sshll.u32 %s257_s12, 4  ;;  %s263_s18 = sshll.u32 %s261_s27, 4  ;;  %s266_s13 = int_to_ptr.vmem [resolvable:$true] %s265_s13  ;;  %s264_s18 = int_to_ptr.hbm [resolvable:$true] %s263_s18 }
  0x1e   : > { %p634_p8 = pnand %p642_p5, %p949_p11  ;;  %s254_s15 = scalar_lea.sflag [#allocation3], %s253_s30 }
  0x1f   : > { %274 = sbr.rel (%p930_p3) target bundleno = 456 (0x1c8), region = 44  ;;  %s983_s1 = sand.u32 (!%p930_p3), 1, %s834_s22  }
  0x20   : > { %636 = dma.hbm_to_vmem [thread:$0]  (!%p634_p8), %s264_s18, 128, %s266_s13, %s254_s15  }
  0x21   : > { %s574_s9 = sshll.u32 (!%p930_p3), %s983_s1, 3  ;;  %s277_s7 = scalar_lea.sflag (!%p930_p3), [#allocation3], %s983_s1 }
  0x22   : > { %s280_s10 = scalar_lea.vmem (!%p930_p3), [#allocation2], %s574_s9 }
  0x24   : > { %817 = dma.done.wait (%p955_p12), %s277_s7, 128  }
  0x25   : > { %819 = vsyncadd (%p955_p12), %s277_s7, 4294967168 }
  0x26   : > { %821 = dma.done.wait (%p922_p1), [#allocation6], 1024  }
  0x27   : > { %823 = vsyncadd (%p922_p1), [#allocation6], 4294966272  ;;  %v321_v0 = vld [vmem:[%s280_s10] sm:$0xff]  ;;  %v618_v9 = vld [vmem:[#allocation5 + $0x28] sm:$0xff]  ;;  %s610_s27 = sshll.u32 %s842_s24, 3  ;;  %s317_s10 = scalar_lea.vmem [#allocation7], %s574_s9 }
  0x28   : > { %322 = vadd.xlane.f32.xlu0 %v321_v0  ;;  %v696_v3 = vld [vmem:[%s1054_s5] ss:$0 sm:$0xff]  ;;  %v620_v7 = vld [vmem:[#allocation5 + $0x38] sm:$0xff]  ;;  %v617_v10 = vld [vmem:[#allocation5 + $0x20] sm:$0xff]  ;;  %s457_s7 = scalar_lea.hbm %s1055_s6, %s610_s27  ;;  %s459_s8 = sshll.u32 %s317_s10, 4  ;;  %s460_s8 = int_to_ptr.vmem [resolvable:$true] %s459_s8 }
  0x29   : > { %429 = vmatpush.bf16.msra.mxu0 %v620_v7  ;;  %v619_v8 = vld [vmem:[#allocation5 + $0x30] sm:$0xff]  ;;  %v616_v11 = vld [vmem:[#allocation5 + $0x18] sm:$0xff]  ;;  %v614_v13 = vld [vmem:[#allocation5 + $0x8] sm:$0xff]  ;;  %s461_s16 = sshll.u32 %s457_s7, 4  ;;  %s446_s24 = scalar_lea.sflag [#allocation4], %s983_s1  ;;  %s462_s16 = int_to_ptr.hbm [resolvable:$true] %s461_s16 }
  0x2a   : > { %v615_v12 = vld [vmem:[#allocation5 + $0x10] sm:$0xff]  ;;  %v613_v16 = vld [vmem:[#allocation5] sm:$0xff]  ;;  %s778_s28 = sshra.s32 %s462_s16, 4  ;;  %s784_s9 = scalar_lea.hbm %s1055_s6, 16  ;;  %s779_s28 = int_to_ptr.hbm [resolvable:$true] %s778_s28 }
  0x2b   : > { %v697_v28 = vld [vmem:[%s1052_s3] ss:$0 sm:$0xff]  ;;  %s780_s17 = scalar_lea.hbm %s779_s28, 8  ;;  %p785_p10 = scmp.lt.s32.totalorder %s779_s28, %s1055_s6 }
  0x2c   : > { %v698_v31 = vld [vmem:[%s1053_s4] ss:$0 sm:$0xff]  ;;  %p781_p1 = scmp.ne.s32.totalorder %s779_s28, %s780_s17  ;;  %p786_p11 = scmp.lt.s32.totalorder %s784_s9, %s780_s17 }
  0x2d   : > { %430 = vmatpush.bf16.msra.mxu0 %v619_v8  ;;  %v699_v35 = vld [vmem:[%s1051_s2] ss:$0 sm:$0xff] }
  0x2e   : > { %p782_p3 = pnand %p781_p1, %p961_p4  ;;  %p787_p12 = por %p786_p11, %p785_p10 }
  0x30   : > { %p783_p9 = pneg %p782_p3 }
  0x31   : > { %431 = vmatpush.bf16.msra.mxu0 %v618_v9 }
  0x32   : > { %p788_p13 = pnand %p787_p12, %p783_p9 }
  0x35   : > { %432 = vmatpush.bf16.msra.mxu0 %v617_v10 }
  0x39   : > { %433 = vmatpush.bf16.msra.mxu0 %v616_v11 }
  0x3d   : > { %434 = vmatpush.bf16.msra.mxu0 %v615_v12 }
  0x41   : > { %435 = vmatpush.bf16.msra.mxu0 %v614_v13 }
  0x45   : > { %436 = vmatpush.bf16.msra.mxu0 %v613_v16 }
  0x9b   : > { %v323_v1 = vpop.xlane.xlu0 %322 }
  0x9c   : > { %v324_v2 = vmul.f32 0.03125, %v323_v1 }
  0x9e   : > { %v325_v4 = vsub.f32 %v321_v0, %v324_v2 }
  0xa0   : > { %v330_v5 = vmul.f32 %v696_v3, %v325_v4 }
  0xa2   : > { %v331_v6 = vmul.f32 %v330_v5, %v330_v5 }
  0xa4   : > { %332 = vadd.xlane.f32.xlu0 %v331_v6 }
 0x117   : > { %v333_v14 = vpop.xlane.xlu0 %332 }
 0x118   : > { %v334_v15 = vmul.f32 0.032258064, %v333_v14 }
 0x11a   : > { %700 = vrsqrt.f32 %v334_v15  ;;  %vm342_vm0 = vcmp.eq.f32.partialorder %v334_v15, inf  ;;  %v345_v24 = vand.u32 2147483648, %v334_v15  ;;  %vm344_vm1 = vcmp.eq.f32.partialorder %v334_v15, 0.0 }
 0x120   : > { %v701_v17 = vpop.eup %700 }
 0x121   : > { %v336_v18 = vmul.f32 %v701_v17, %v334_v15 }
 0x123   : > { %v337_v19 = vmul.f32 %v701_v17, %v336_v18 }
 0x125   : > { %v338_v20 = vmul.f32 0.5, %v337_v19 }
 0x127   : > { %v339_v21 = vsub.f32 1.5, %v338_v20 }
 0x129   : > { %v340_v22 = vmul.f32 %v701_v17, %v339_v21 }
 0x12b   : > { %v341_v23 = vmul.f32 %v340_v22, %v334_v15 }
 0x12d   : > { %v343_v25 = vsel %vm342_vm0, %v334_v15, %v341_v23 }
 0x12e   : > { %v346_v26 = vsel %vm344_vm1, %v345_v24, %v343_v25 }
 0x12f   : > { %v347_v27 = vadd.f32 1e-06, %v346_v26 }
 0x131   : > { %702 = vrcp.f32 %v347_v27 }
 0x137   : > { %v703_v29 = vpop.eup %702 }
 0x138   : > { %v353_v30 = vmul.f32 %v703_v29, %v697_v28 }
 0x13a   : > { %v354_v32 = vmul.f32 %v353_v30, %v330_v5 }
 0x13c   : > { %v359_v33 = vadd.f32 %v698_v31, %v354_v32 }
 0x13e   : > { %v360_v34 = vpack.c.bf16 %v359_v33, %v359_v33 }
 0x140   : > { %437 = vmatmul.bf16.vlgmr.msra.gmra.mxu0 %v360_v34 }
 0x1bd   : > { %v438_v36 = vpop.f32.mrf.mxu0 }
 0x1be   : > { %v439_v37 = vadd.f32 %v699_v35, %v438_v36 }
 0x1c0   : > { %v442_v38 = vmax.f32 %v439_v37, 0.0 }
 0x1c2   : > { %v443_v39 = vadd.f32 %v442_v38, %v321_v0 }
 0x1c4   : > { %444 = vst [vmem:[%s317_s10] sm:$0xff] %v443_v39 }
 0x1c5   : > { %v440_v40 = vpop.f32.mrf.mxu0 }
 0x1c6   : > { %791 = shalt.err (!%p788_p13)
}
 0x1c7   : > { %627 = dma.vmem_to_hbm [thread:$0]  (%p961_p4), %s460_s8, 128, %s462_s16, %s446_s24  }
 0x1c8 PF: > { %s473_s1 = sand.u32 1, %s830_s21   ;;  %p638_p0 = pnand %p570_p6, %p969_p7 }
 0x1c9   : > { %s474_s13 = scalar_lea.sflag [#allocation4], %s473_s1 }
 0x1ca   : > { %p639_p2 = pneg %p638_p0 }
 0x1cc   : > { %825 = dma.done.wait (%p639_p2), %s474_s13, 128  }
 0x1cd   : > { %827 = vsyncadd (%p639_p2), %s474_s13, 4294967168  ;;  %s23_s26 = sadd.s32 1, %s850_s26   ;;  %s1064_s21 = smov %s834_s22 }
 0x1ce   : > { %p20_p5 = scmp.ge.s32.totalorder %s23_s26, 4   ;;  %s1065_s22 = smov %s838_s23 }
 0x1cf   : > { %s1066_s23 = smov %s967_s20  ;;  %s1067_s24 = smov %s846_s25 }
 0x1d0   : > { %s1068_s25 = smov %s1070_s14  ;;  %22 = sbr.rel (!%p20_p5) target bundleno = 9 (0x9), region = 97 }
 0x1d5   :  { %480 = vsyncpa [#allocation3], 1 }
 0x1d6   :  { %482 = vsyncpa [#allocation3 + $0x1], 1 }
 0x1d7   :  { %483 = vsyncpa [#allocation6], 1 }
 0x1d8   :  { %484 = vsyncpa [#allocation4], 1 }
 0x1d9   :  { %486 = vsyncpa [#allocation4 + $0x1], 1 }

</bundles_post_ra>
